<compile_context>
chip_gen: v5e
topology: v5e:2x2
jax: 0.10.0
libtpu: 0.0.40
codegen_flags: <defaults>
</compile_context>

<pallas_src>
import functools

import jax
import jax.numpy as jnp
from jax import lax
from jax.experimental import pallas as pl
from jax.experimental.pallas import tpu as pltpu


def _round_up(x, m):
    return (x + m - 1) // m * m


# ----------------------------------------------------------------------------
# Pallas kernel: (C2,K) x (K, ts) MXU GEMM + f32 BN epilogue + SiLU, output
# written directly in channels-first (C2, spatial) layout.
# ----------------------------------------------------------------------------
def _focus_kernel(x_ref, w_ref, scale_ref, bias_ref, o_ref):
    # x_ref:     (K, ts)   bf16   K = 4*C1 space-to-depth channels, spatial on lanes
    # w_ref:     (C2, K)   bf16   1x1 conv weight (unscaled)
    # scale_ref: (C2, 1)   f32    gamma / sqrt(running_var + eps)
    # bias_ref:  (C2, 1)   f32    beta - running_mean * scale
    # o_ref:     (C2, ts)  out dtype
    acc = jnp.dot(w_ref[...], x_ref[...], preferred_element_type=jnp.float32)
    y = acc * scale_ref[...] + bias_ref[...]            # BatchNorm (eval) in f32
    o_ref[...] = (y * jax.nn.sigmoid(y)).astype(o_ref.dtype)  # SiLU


def _pick_spatial_tile(S, bytes_per_lane, budget_bytes):
    """Largest spatial tile that divides S, is lane-aligned, fits the budget."""
    cap = max(128, budget_bytes // max(bytes_per_lane, 1))
    if S <= cap:
        return S                       # full extent (allowed even if not %128)
    cap = (cap // 128) * 128
    best, t = 0, 128
    while t <= cap:
        if S % t == 0:
            best = t
        t += 128
    # Fallback: no lane-aligned divisor -> full extent (rare; vmem limit below
    # is sized from the actual tile so this stays correct, just less tiled).
    return best if best > 0 else S


def focus_forward(x, w, gamma, beta, run_mean, run_var, eps=1e-5, *,
                  out_dtype=None, spatial_tile=None):
    """Focus.forward (module defaults) on NCHW input via a Pallas TPU kernel.

    x : (N, C1, H, W) float32, H and W even
    w : (C2, 4*C1, 1, 1)  conv weight (bias=False)
    gamma, beta, run_mean, run_var : (C2,)  BatchNorm2d params (eval mode)
    out_dtype : output dtype (default: x.dtype; pass jnp.bfloat16 to halve
                output HBM writeback on bandwidth-limited chips)
    returns (N, C2, H//2, W//2)
    """
    N, C1, H, W = x.shape
    assert H % 2 == 0 and W % 2 == 0, "Focus requires even spatial dims"
    C2 = w.shape[0]
    assert w.shape == (C2, 4 * C1, 1, 1)
    Ho, Wo = H // 2, W // 2
    K = 4 * C1
    S = Ho * Wo
    out_dtype = x.dtype if out_dtype is None else out_dtype
    out_bytes = jnp.dtype(out_dtype).itemsize

    # --- space-to-depth, channels-first kernel layout, bf16 cast (one pass) --
    # (N,C1,H,W) -> (N,C1,Ho,dh,Wo,dw) -> (N, dh,dw,C1, Ho,Wo) -> (N, K, S)
    xs = x.reshape(N, C1, Ho, 2, Wo, 2)
    xs = jnp.transpose(xs, (0, 3, 5, 1, 2, 4)).reshape(N, K, S)
    xs = xs.astype(jnp.bfloat16)

    # --- weight: permute rows from torch's cat order (g = dh + 2*dw) to
    # (dh, dw, c) to match xs; keep UNscaled in bf16 -------------------------
    w2 = w[:, :, 0, 0].reshape(C2, 2, 2, C1)            # (C2, dw, dh, c)
    w_mat = jnp.transpose(w2, (0, 2, 1, 3)).reshape(C2, K).astype(jnp.bfloat16)

    # --- BN (eval) as f32 epilogue scale/bias, per-sublane (C2, 1) ----------
    scale_v = gamma / jnp.sqrt(run_var + eps)
    bias_v = beta - run_mean * scale_v
    scale = scale_v.astype(jnp.float32).reshape(C2, 1)
    bias = bias_v.astype(jnp.float32).reshape(C2, 1)

    # --- VMEM-aware spatial tile selection (padded dims, 2 buffers each) ----
    kp = _round_up(K, 16)                               # bf16 sublane padding
    c2p_acc = _round_up(C2, 8)                          # f32 acc sublanes
    c2p_out = _round_up(C2, 16 if out_bytes == 2 else 8)
    bytes_per_lane = (2 * kp * 2                        # x tile   (x2 buffers)
                      + 2 * c2p_out * out_bytes         # out tile (x2 buffers)
                      + 2 * c2p_acc * 4)                # f32 acc + epilogue temp
    try:
        vmem_cap = int(getattr(pltpu.get_tpu_info(), "vmem_capacity_bytes",
                               64 << 20))
    except Exception:                                   # conservative fallback
        vmem_cap = 64 << 20
    budget = max(4 << 20, min(16 << 20, vmem_cap // 5))

    if spatial_tile is None:
        ts = _pick_spatial_tile(S, bytes_per_lane, budget)
        if N == 1 and S // ts < 2:
            # keep >= 2 grid steps so v7x's two TensorCores both get work
            t, half = 128, 0
            while t <= S // 2:
                if S % t == 0:
                    half = t
                t += 128
            if half:
                ts = half
    else:
        ts = int(spatial_tile)
    assert S % ts == 0 and (ts % 128 == 0 or ts == S), (
        "spatial_tile must divide Ho*Wo and be a multiple of 128 (or the "
        "full spatial extent)")

    grid = (N, S // ts)

    tsp = _round_up(ts, 128)
    vmem_est = (2 * kp * tsp * 2                              # x blocks
                + 2 * c2p_out * tsp * out_bytes               # out blocks
                + 2 * c2p_acc * tsp * 4                       # f32 acc/temps
                + 2 * _round_up(C2, 16) * _round_up(K, 128) * 2   # weight
                + 4 * c2p_acc * 128 * 4)                      # scale + bias
    vmem_limit = int(min(max(2 * vmem_est, 8 << 20), int(vmem_cap * 0.6)))

    cost = pl.CostEstimate(
        flops=2 * N * S * K * C2,
        transcendentals=N * S * C2,                     # sigmoid in SiLU
        bytes_accessed=(N * K * S * 2 + C2 * K * 2 + 2 * C2 * 4
                        + N * C2 * S * out_bytes),
    )

    out = pl.pallas_call(
        _focus_kernel,
        out_shape=jax.ShapeDtypeStruct((N, C2, S), out_dtype),
        grid_spec=pltpu.PrefetchScalarGridSpec(
            num_scalar_prefetch=0,
            grid=grid,
            in_specs=[
                pl.BlockSpec((None, K, ts), lambda n, j: (n, 0, j)),
                pl.BlockSpec((C2, K), lambda n, j: (0, 0)),
                pl.BlockSpec((C2, 1), lambda n, j: (0, 0)),
                pl.BlockSpec((C2, 1), lambda n, j: (0, 0)),
            ],
            out_specs=pl.BlockSpec((None, C2, ts), lambda n, j: (n, 0, j)),
        ),
        compiler_params=pltpu.CompilerParams(
            dimension_semantics=("parallel", "parallel"),
            vmem_limit_bytes=vmem_limit),
        cost_estimate=cost,
    )(xs, w_mat, scale, bias)

    # (N, C2, Ho*Wo) -> (N, C2, Ho, Wo): contiguous reshape, no data movement.
    return out.reshape(N, C2, Ho, Wo)


# ----------------------------------------------------------------------------
# Pure-JAX reference mirroring the PyTorch module (eval-mode BN)
# ----------------------------------------------------------------------------
def focus_reference(x, w, gamma, beta, run_mean, run_var, eps=1e-5):
    xs = jnp.concatenate(
        [x[..., ::2, ::2], x[..., 1::2, ::2], x[..., ::2, 1::2], x[..., 1::2, 1::2]],
        axis=1)
    dn = lax.conv_dimension_numbers(xs.shape, w.shape, ("NCHW", "OIHW", "NCHW"))
    y = lax.conv_general_dilated(xs, w, (1, 1), ((0, 0), (0, 0)),
                                 dimension_numbers=dn)
    scale = gamma / jnp.sqrt(run_var + eps)
    bias = beta - run_mean * scale
    y = y * scale.reshape(1, -1, 1, 1) + bias.reshape(1, -1, 1, 1)
    return y * jax.nn.sigmoid(y)


if __name__ == "__main__":
    def make_inputs(key, N, C1, C2, H, W):
        kx, kw, kg, kb, km, kv = jax.random.split(key, 6)
        x = jax.random.normal(kx, (N, C1, H, W), dtype=jnp.float32)
        w = jax.random.normal(kw, (C2, 4 * C1, 1, 1), dtype=jnp.float32) * 0.1
        gamma = 1.0 + 0.1 * jax.random.normal(kg, (C2,), dtype=jnp.float32)
        beta = 0.1 * jax.random.normal(kb, (C2,), dtype=jnp.float32)
        mean = 0.1 * jax.random.normal(km, (C2,), dtype=jnp.float32)
        var = jnp.abs(1.0 + 0.1 * jax.random.normal(kv, (C2,), dtype=jnp.float32))
        return x, w, gamma, beta, mean, var

    k1, k2 = jax.random.split(jax.random.PRNGKey(0))

    # config 1: N=2, C1=4, C2=8, 16x16 -> one spatial block per image, grid (2,1)
    args1 = make_inputs(k1, 2, 4, 8, 16, 16)
    ref1 = focus_reference(*args1)
    out1 = jax.jit(focus_forward)(*args1)
    jax.block_until_ready(out1)
    assert out1.shape == (2, 8, 8, 8) and out1.dtype == jnp.float32
    assert jnp.allclose(out1, ref1, atol=2e-2, rtol=2e-2), "mismatch (config 1)"

    # bf16-output path (halves HBM writeback; largest relative win on v5e)
    out1b = jax.jit(functools.partial(focus_forward, out_dtype=jnp.bfloat16))(*args1)
    jax.block_until_ready(out1b)
    assert out1b.dtype == jnp.bfloat16
    assert jnp.allclose(out1b.astype(jnp.float32), ref1, atol=3e-2, rtol=3e-2), \
        "mismatch (config 1, bf16 output)"

    # config 2: N=1, C1=3 (K=12, non-multiple-of-8 full-extent block), C2=16,
    # 32x32 with an explicit 128-lane spatial tile -> spatial grid of 2
    args2 = make_inputs(k2, 1, 3, 16, 32, 32)
    ref2 = focus_reference(*args2)
    out2 = jax.jit(functools.partial(focus_forward, spatial_tile=128))(*args2)
    jax.block_until_ready(out2)
    assert out2.shape == (1, 16, 16, 16)
    assert jnp.allclose(out2, ref2, atol=2e-2, rtol=2e-2), "mismatch (config 2)"

    print("KERNEL_OK")
</pallas_src>

<mosaic_0001>
module attributes {stable_mosaic.version = 11 : i64} {
  func.func @_focus_kernel(%arg0: i32, %arg1: i32, %arg2: memref<1x16x64xbf16, #tpu.memory_space<vmem>>, %arg3: memref<8x16xbf16, #tpu.memory_space<vmem>>, %arg4: memref<8x1xf32, #tpu.memory_space<vmem>>, %arg5: memref<8x1xf32, #tpu.memory_space<vmem>>, %arg6: memref<1x8x64xf32, #tpu.memory_space<vmem>>) attributes {dimension_semantics = [#tpu.dimension_semantics<parallel>, #tpu.dimension_semantics<parallel>], iteration_bounds = array<i64: 2, 1>, scalar_prefetch = 0 : i64, scratch_operands = 0 : i64, tpu.core_type = #tpu.core_type<tc>, window_params = [{transform_indices = @transform_0, window_bounds = array<i64: 1, 16, 64>}, {pipeline_mode = #tpu.pipeline_mode<synchronous>, transform_indices = @transform_1, window_bounds = array<i64: 8, 16>}, {pipeline_mode = #tpu.pipeline_mode<synchronous>, transform_indices = @transform_2, window_bounds = array<i64: 8, 1>}, {pipeline_mode = #tpu.pipeline_mode<synchronous>, transform_indices = @transform_3, window_bounds = array<i64: 8, 1>}, {transform_indices = @transform_4, window_bounds = array<i64: 1, 8, 64>}]} {
    %c0 = arith.constant 0 : index
    %c0_0 = arith.constant 0 : index
    %0 = vector.load %arg3[%c0, %c0_0] : memref<8x16xbf16, #tpu.memory_space<vmem>>, vector<8x16xbf16>
    %c0_1 = arith.constant 0 : index
    %c0_2 = arith.constant 0 : index
    %c0_3 = arith.constant 0 : index
    %1 = vector.load %arg2[%c0_1, %c0_2, %c0_3] : memref<1x16x64xbf16, #tpu.memory_space<vmem>>, vector<1x16x64xbf16>
    %2 = vector.shape_cast %1 : vector<1x16x64xbf16> to vector<16x64xbf16>
    %cst = arith.constant dense<0.000000e+00> : vector<8x64xf32>
    %3 = tpu.matmul %0, %2, %cst {dimension_numbers = #tpu.dot_dimension_numbers<[1], [0], [0], [1], [0, 0, 1, 1], [], []>} : vector<8x16xbf16>, vector<16x64xbf16>, vector<8x64xf32> -> vector<8x64xf32>
    %c0_4 = arith.constant 0 : index
    %c0_5 = arith.constant 0 : index
    %4 = vector.load %arg4[%c0_4, %c0_5] : memref<8x1xf32, #tpu.memory_space<vmem>>, vector<8x1xf32>
    %5 = vector.broadcast %4 : vector<8x1xf32> to vector<8x64xf32>
    %6 = arith.mulf %3, %5 : vector<8x64xf32>
    %c0_6 = arith.constant 0 : index
    %c0_7 = arith.constant 0 : index
    %7 = vector.load %arg5[%c0_6, %c0_7] : memref<8x1xf32, #tpu.memory_space<vmem>>, vector<8x1xf32>
    %8 = vector.broadcast %7 : vector<8x1xf32> to vector<8x64xf32>
    %9 = arith.addf %6, %8 : vector<8x64xf32>
    %10 = arith.negf %9 : vector<8x64xf32>
    %11 = math.exp %10 : vector<8x64xf32>
    %cst_8 = arith.constant 1.000000e+00 : f32
    %12 = vector.broadcast %cst_8 : f32 to vector<8x64xf32>
    %13 = arith.addf %12, %11 : vector<8x64xf32>
    %14 = arith.divf %12, %13 : vector<8x64xf32>
    %15 = arith.mulf %9, %14 : vector<8x64xf32>
    %c0_9 = arith.constant 0 : index
    %c0_10 = arith.constant 0 : index
    %c0_11 = arith.constant 0 : index
    %16 = vector.load %arg6[%c0_9, %c0_10, %c0_11] : memref<1x8x64xf32, #tpu.memory_space<vmem>>, vector<1x8x64xf32>
    %17 = vector.shape_cast %16 : vector<1x8x64xf32> to vector<8x64xf32>
    %18 = vector.shape_cast %15 : vector<8x64xf32> to vector<1x8x64xf32>
    tpu.vector_store %arg6[%c0_9, %c0_10, %c0_11], %18 {strides = array<i32>} : memref<1x8x64xf32, #tpu.memory_space<vmem>>, vector<1x8x64xf32>,
    return
  }
  func.func @transform_0(%arg0: i32, %arg1: i32) -> (i32, i32, i32) {
    %c0_i32 = arith.constant 0 : i32
    %c0_i32_0 = arith.constant 0 : i32
    return %arg0, %c0_i32, %arg1 : i32, i32, i32
  }
  func.func @transform_1(%arg0: i32, %arg1: i32) -> (i32, i32) {
    %c0_i32 = arith.constant 0 : i32
    %c0_i32_0 = arith.constant 0 : i32
    %c0_i32_1 = arith.constant 0 : i32
    return %c0_i32, %c0_i32_0 : i32, i32
  }
  func.func @transform_2(%arg0: i32, %arg1: i32) -> (i32, i32) {
    %c0_i32 = arith.constant 0 : i32
    %c0_i32_0 = arith.constant 0 : i32
    %c0_i32_1 = arith.constant 0 : i32
    return %c0_i32, %c0_i32_0 : i32, i32
  }
  func.func @transform_3(%arg0: i32, %arg1: i32) -> (i32, i32) {
    %c0_i32 = arith.constant 0 : i32
    %c0_i32_0 = arith.constant 0 : i32
    %c0_i32_1 = arith.constant 0 : i32
    return %c0_i32, %c0_i32_0 : i32, i32
  }
  func.func @transform_4(%arg0: i32, %arg1: i32) -> (i32, i32, i32) {
    %c0_i32 = arith.constant 0 : i32
    %c0_i32_0 = arith.constant 0 : i32
    return %arg0, %c0_i32, %arg1 : i32, i32, i32
  }
}

</mosaic_0001>

<bundles_post_ra>
// kernel: focus_forward.1
= control target key start
LH: loop header
LB: loop body
LE: loop exit
PB: predicated region body
PF: predicated region fallthrough
CT: control target
= control target key end

     0   :  { %s465_s15 = smov 0   ;;  %s467_s16 = smov 0   ;;  %s514_s0 = inlined_call_operand.vmem [shape: bf16[2,16,64], index: 0, kind: input, shape index: {}]   ;;  %s515_s1 = inlined_call_operand.vmem [shape: bf16[8,16], index: 1, kind: input, shape index: {}]   ;;  %s516_s2 = inlined_call_operand.vmem [shape: f32[8,1], index: 2, kind: input, shape index: {}]   ;;  %s517_s3 = inlined_call_operand.vmem [shape: f32[8,1], index: 3, kind: input, shape index: {}]   ;;  %s518_s4 = inlined_call_operand.vmem [shape: f32[2,8,64], index: 4, kind: output, shape index: {}]  }
   0x1   :  { %s469_s17 = smov 0  }
   0x2 LB: > { %s26_s18 = sadd.s32 1, %s433_s16  ;;  %p371_p0 = scmp.ge.s32.totalorder %s437_s17, 1  ;;  %s437_s17 = sphi %s469_s17, %s14_s17   ;;  %s433_s16 = sphi %s467_s16, %s520_s16   ;;  %s429_s15 = sphi %s465_s15, %s519_s15  }
   0x3   : > { %p28_p1 = scmp.ge.s32.totalorder %s26_s18, 2  ;;  %p181_p2 = scmp.lt.s32.totalorder %s437_s17, 3 }
   0x5   : > { %s522_s18 = smov (%p28_p1, %s26_s18), 0  ;;  %p182_p3 = pnand %p371_p0, %p181_p2 }
   0x6   : > { %p212_p4 = scmp.lt.s32.totalorder (!%p182_p3), %s429_s15, 1 }
   0x7   : > { %185 = sbr.rel (%p182_p3) target bundleno = 180 (0xb4), region = 36 }
   0xc   : > { %v254_v0 = vld [vmem:[%s516_s2] sm:$0xff]  ;;  %v439_v1 = vmov 0   ;;  %s524_s15 = smov (!%p212_p4, %s429_s15), 1  ;;  %vm237_vm0 = vcmask 130048   ;;  %vm288_vm5 = vcmask 523264  }
   0xd   : > { %410 = vset.pattern.permute.xlu0 %v439_v1  ;;  %s383_s21 = sshll.u32 %s524_s15, 3  ;;  %v261_v3 = vld [vmem:[%s517_s3] sm:$0xff] }
   0xe   : > { %257 = vperm.xlu0 %410, %v254_v0   ;;  %s219_s24 = scalar_lea.vmem %s514_s0, %s383_s21  ;;  %v228_v4 = vld [vmem:[%s515_s1] sm:$0xf]  ;;  %s226_s5 = scalar_lea.vmem %s518_s4, %s383_s21 }
   0xf   : > { %v384_v2 = vld [vmem:[%s219_s24] sm:$0xff] }
  0x10   : > { %248 = vmatpush.bf16.msra.mxu0 %v384_v2 }
  0x13   : > { %379 = vmatmul.msk.bf16.vlgmr.msra.gmra.mxu0 %vm237_vm0, %v228_v4 }
  0x16   : > { %264 = vperm.xlu0 %410, %v261_v3  }
  0x80   : > { %v258_v5 = vpop.permute.xlu0 %257 }
  0x88   : > { %v265_v8 = vpop.permute.xlu0 %264 }
  0x90   : > { %v250_v6 = vpop.f32.mrf.mxu0 }
  0x91   : > { %v260_v7 = vmul.f32 %v258_v5, %v250_v6 }
  0x93   : > { %v267_v9 = vadd.f32 %v265_v8, %v260_v7 }
  0x95   : > { %v380_v10 = vmul.f32 -1.442695, %v267_v9 }
  0x97   : > { %411 = vpow2.f32 %v380_v10 }
  0x98   : > { %v252_v11 = vpop.f32.mrf.mxu0 }
  0x9d   : > { %v412_v12 = vpop.eup %411 }
  0x9e   : > { %v271_v13 = vadd.f32 1.0, %v412_v12 }
  0xa0   : > { %413 = vrcp.f32 %v271_v13  ;;  %v283_v17 = vand.u32 2147483648, %v271_v13  ;;  %v281_v19 = vand.u32 2147483647, %v271_v13  ;;  %vm277_vm2 = vweird.f32 %v271_v13 }
  0xa2   : > { %v284_v21 = vor.u32 1.1754944e-38, %v283_v17  ;;  %vm282_vm4 = vcmp.eq.f32.partialorder %v281_v19, 8.507059e+37 }
  0xa6   : > { %v414_v14 = vpop.eup %413 }
  0xa7   : > { %v273_v15 = vmul.f32 %v414_v14, %v271_v13  ;;  %vm278_vm1 = vweird.f32 %v414_v14 }
  0xa8   : > { %vm279_vm3 = vmor %vm277_vm2, %vm278_vm1 }
  0xa9   : > { %v274_v16 = vsub.f32 1.0, %v273_v15 }
  0xab   : > { %v275_v18 = vmul.f32 %v414_v14, %v274_v16 }
  0xad   : > { %v276_v20 = vadd.f32 %v414_v14, %v275_v18 }
  0xaf   : > { %v280_v22 = vsel %vm279_vm3, %v414_v14, %v276_v20 }
  0xb0   : > { %v285_v23 = vsel %vm282_vm4, %v284_v21, %v280_v22 }
  0xb1   : > { %v287_v24 = vmul.f32 %v285_v23, %v267_v9 }
  0xb3   : > { %289 = vst.msk [vmem:[%s226_s5] sm:$0xff] %vm288_vm5, %v287_v24 }
  0xb4 PF: > { %s14_s17 = sadd.s32 1, %s437_s17   ;;  %s519_s15 = smov %s433_s16 }
  0xb5   : > { %p11_p5 = scmp.ge.s32.totalorder %s14_s17, 4   ;;  %s520_s16 = smov %s522_s18 }
  0xb7   :  { %13 = sbr.rel (!%p11_p5) target bundleno = 2 (0x2), region = 66 }

</bundles_post_ra>
